<compile_context>
chip_gen: v7x
topology: tpu7x:2x2x1
jax: 0.10.0
libtpu: 0.0.40
codegen_flags: <defaults>
</compile_context>

<pallas_src>
import numpy as np
import jax
import jax.numpy as jnp
from jax.experimental import pallas as pl
from jax.experimental.pallas import tpu as pltpu


# ---------------------------------------------------------------------------
# Host-side: collapse the conv(1x3,pad1)/avgpool(1x2) chain into out = M@x + c
# ---------------------------------------------------------------------------
def build_affine(params, w):
    """Compose the conv/pool chain into out[oc] = M[oc,:] @ x_width + c[oc]."""
    T = np.eye(w, dtype=np.float64)[None, :, :]          # (C=1, W=w, w)
    d = np.zeros((1, w), dtype=np.float64)

    def conv(T, d, Wt, bt):                              # kernel 3, stride 1, pad 1
        Wt = np.asarray(Wt, np.float64)
        if Wt.ndim == 4:                                 # torch Conv2d (oc, ic, 1, 3)
            Wt = Wt[:, :, 0, :]
        bt = np.asarray(bt, np.float64)
        C_in, W_in = T.shape[0], T.shape[1]
        C_out = Wt.shape[0]
        T2 = np.zeros((C_out, W_in, w), dtype=np.float64)
        d2 = np.zeros((C_out, W_in), dtype=np.float64)
        for oc in range(C_out):
            d2[oc, :] = bt[oc]
            for j in range(W_in):
                for ic in range(C_in):
                    for k in range(3):
                        s = j + k - 1
                        if 0 <= s < W_in:
                            T2[oc, j] += Wt[oc, ic, k] * T[ic, s]
                            d2[oc, j] += Wt[oc, ic, k] * d[ic, s]
        return T2, d2

    def pool(T, d, pad):                                 # kernel 2, stride 2
        # AvgPool2d default count_include_pad=True => divisor is always 2.
        C, W_in = T.shape[0], T.shape[1]
        W_out = (W_in + 2 * pad - 2) // 2 + 1
        T2 = np.zeros((C, W_out, w), dtype=np.float64)
        d2 = np.zeros((C, W_out), dtype=np.float64)
        for ci in range(C):
            for j in range(W_out):
                for i in (2 * j - pad, 2 * j - pad + 1):
                    if 0 <= i < W_in:
                        T2[ci, j] += 0.5 * T[ci, i]
                        d2[ci, j] += 0.5 * d[ci, i]
        return T2, d2

    (w1, b1), (w2, b2), (w3, b3), (w4, b4) = params
    T, d = conv(T, d, w1, b1); T, d = pool(T, d, 0)
    T, d = conv(T, d, w2, b2); T, d = pool(T, d, 1)
    T, d = conv(T, d, w3, b3); T, d = pool(T, d, 1)
    T, d = conv(T, d, w4, b4); T, d = pool(T, d, 0)

    assert T.shape[1] == 1, (
        "PatchConvModule's final view(B,-1,h) requires final width == 1 "
        f"(got {T.shape[1]}); use w=10 as in the original module.")
    return T[:, 0, :].astype(np.float32), d[:, 0].astype(np.float32)   # (16,w),(16,)


# ---------------------------------------------------------------------------
# Pallas kernel
# ---------------------------------------------------------------------------
_H_CHUNK = 256   # h rows (== output lanes) per MXU dot: bounds live vregs


def _affine_kernel(m_ref, c_ref, x_ref, o_ref):
    """o[b] = M @ x[b]^T + c for every batch row folded into this block.

    x block : (TB, TH, w)      -- natural input layout (h sublanes, w lanes)
    o block : (TB, n_out, TH)  -- lane-dense along h
    The w-contraction uses the A.B^T dot_general form so no big explicit
    transpose is materialised; accumulation is f32 at default MXU precision.
    """
    m = m_ref[...]                                    # (n_out, w), same dtype as x
    c = c_ref[...]                                    # (n_out, 1), f32
    tb_count, th = x_ref.shape[0], x_ref.shape[1]

    def one_row(tb, carry):
        # Static chunking over h keeps per-dot live values small regardless
        # of the block's h extent (vreg file is only 64 registers).
        for off in range(0, th, _H_CHUNK):
            size = min(_H_CHUNK, th - off)
            xc = x_ref[tb, pl.ds(off, size), :]       # (size, w)
            y = jax.lax.dot_general(                  # (n_out, size), f32 acc
                m, xc, (((1,), (1,)), ((), ())),
                preferred_element_type=jnp.float32)
            o_ref[tb, :, pl.ds(off, size)] = (y + c).astype(o_ref.dtype)
        return carry

    jax.lax.fori_loop(0, tb_count, one_row, 0)


# ---------------------------------------------------------------------------
# Tiling helpers
# ---------------------------------------------------------------------------
def _round_up(x, m):
    return (x + m - 1) // m * m


def _vmem_capacity_bytes():
    try:
        return int(pltpu.get_tpu_info().vmem_capacity_bytes)
    except Exception:
        return 64 << 20          # conservative: v7x per-TensorCore VMEM


def _pick_tb(B, target):
    """Batch fold TB <= target.  Prefer a divisor of B (>= target/2, no batch
    padding); otherwise pad B up to a multiple of target so TB never collapses
    to 1 for awkward B."""
    target = max(1, min(B, target))
    for tb in range(target, 0, -1):
        if B % tb == 0 and 2 * tb > target:
            return tb, 0
    return target, (-B) % target


# ---------------------------------------------------------------------------
# Wrapper
# ---------------------------------------------------------------------------
def patch_conv_forward(x, params, h, w, *, out_dtype=None, vmem_fraction=0.55):
    """Forward of PatchConvModule.  `x` is anything reshapeable to (B, h, w).

    The kernel reads x in its own dtype (pass bf16 to halve input HBM traffic
    on v6e/v7x -- no wrapper-side cast/transpose pass is performed).
    out_dtype defaults to x's dtype; pass jnp.bfloat16 to halve the (dominant)
    output write traffic if the consumer accepts it.
    """
    B = x.shape[0]
    x3 = jnp.reshape(x, (B, h, w))                    # free (contiguous) reshape
    if x3.dtype not in (jnp.float32, jnp.bfloat16):
        x3 = x3.astype(jnp.float32)
    in_dtype = x3.dtype
    out_dtype = in_dtype if out_dtype is None else jnp.dtype(out_dtype)

    M, c = build_affine(params, w)                    # (n_out, w), (n_out,) f32
    n_out = M.shape[0]
    m_arr = jnp.asarray(M, dtype=in_dtype)            # same dtype as x: no in-kernel cast
    c_arr = jnp.asarray(c.reshape(n_out, 1), dtype=jnp.float32)   # f32 bias add

    # --- VMEM-budgeted batch fold (blocks use the FULL h extent: no h pad) ---
    isz_in = jnp.dtype(in_dtype).itemsize
    isz_out = jnp.dtype(out_dtype).itemsize
    # tiled-VMEM footprint per batch row (minor dim pads to 128 lanes,
    # second-minor to 8 sublanes); x inflates because w << 128.
    x_row_vmem = _round_up(h, 8) * _round_up(w, 128) * isz_in
    o_row_vmem = _round_up(n_out, 8) * _round_up(h, 128) * isz_out
    per_row = 2 * (x_row_vmem + o_row_vmem)           # double buffered

    vmem_cap = _vmem_capacity_bytes()
    budget = int(vmem_cap * vmem_fraction)
    tb_target = max(1, min(B, budget // max(per_row, 1)))
    if B >= 2:
        tb_target = min(tb_target, (B + 1) // 2)      # >=2 grid steps (v7x: 2 TCs)
    TB, b_pad = _pick_tb(B, tb_target)

    if b_pad:
        # Padding costs one extra copy of x; only taken when B has no divisor
        # near the VMEM-derived target (otherwise TB would collapse to 1 and
        # the ~0.35us/step overhead would dominate).
        x3 = jnp.pad(x3, ((0, b_pad), (0, 0), (0, 0)))
    Bp = B + b_pad
    grid = (Bp // TB,)

    vmem_limit = int(max(16 << 20,
                         min(vmem_cap - (2 << 20), TB * per_row + (4 << 20))))

    out = pl.pallas_call(
        _affine_kernel,
        out_shape=jax.ShapeDtypeStruct((Bp, n_out, h), out_dtype),
        grid=grid,
        in_specs=[
            pl.BlockSpec((n_out, w), lambda i: (0, 0)),        # M (whole, tiny)
            pl.BlockSpec((n_out, 1), lambda i: (0, 0)),        # c (whole, tiny)
            pl.BlockSpec((TB, h, w), lambda i: (i, 0, 0)),     # x rows, natural layout
        ],
        out_specs=pl.BlockSpec((TB, n_out, h), lambda i: (i, 0, 0)),
        compiler_params=pltpu.CompilerParams(
            dimension_semantics=("parallel",),
            vmem_limit_bytes=vmem_limit),
    )(m_arr, c_arr, x3)

    if b_pad:
        out = out[:B]
    # TODO(synk): when B == 1 there is only one grid step, so one v7x
    # TensorCore idles; splitting h would need ragged h blocks.
    return out                                         # (B, 16, h), out_dtype


# ---------------------------------------------------------------------------
# Pure-JAX reference (layer-by-layer conv / reduce_window) for verification
# ---------------------------------------------------------------------------
def reference_forward(x, params, h, w):
    B = x.shape[0]
    a = jnp.reshape(x, (B, 1, h, w)).astype(jnp.float32)

    def conv(a, Wt, bt):
        k = jnp.asarray(Wt, jnp.float32)
        if k.ndim == 3:
            k = k[:, :, None, :]                       # (oc, ic, 1, 3)
        y = jax.lax.conv_general_dilated(
            a, k, window_strides=(1, 1), padding=((0, 0), (1, 1)),
            dimension_numbers=('NCHW', 'OIHW', 'NCHW'),
            precision=jax.lax.Precision.HIGHEST)
        return y + jnp.asarray(bt, jnp.float32)[None, :, None, None]

    def pool(a, pad):
        wpad = (1, 1) if pad else (0, 0)
        s = jax.lax.reduce_window(a, 0.0, jax.lax.add,
                                  (1, 1, 1, 2), (1, 1, 1, 2),
                                  ((0, 0), (0, 0), (0, 0), wpad))
        return s / 2.0                                 # count_include_pad=True

    (w1, b1), (w2, b2), (w3, b3), (w4, b4) = params
    a = conv(a, w1, b1); a = pool(a, False)
    a = conv(a, w2, b2); a = pool(a, True)
    a = conv(a, w3, b3); a = pool(a, True)
    a = conv(a, w4, b4); a = pool(a, False)
    return a.reshape(B, -1, h)


# ---------------------------------------------------------------------------
if __name__ == "__main__":
    B, H, W = 2, 64, 10    # small h for the demo; module default is h=850, w=10

    key = jax.random.PRNGKey(0)
    kx, k1, k2, k3, k4 = jax.random.split(key, 5)
    x = jax.random.normal(kx, (B, H, W), dtype=jnp.float32)

    def init_conv(k, oc, ic):
        kw, kb = jax.random.split(k)
        bound = 1.0 / np.sqrt(ic * 3)
        wgt = jax.random.uniform(kw, (oc, ic, 3), minval=-bound, maxval=bound)
        bia = jax.random.uniform(kb, (oc,), minval=-bound, maxval=bound)
        return np.asarray(wgt, np.float32), np.asarray(bia, np.float32)

    params = [init_conv(k1, 2, 1), init_conv(k2, 4, 2),
              init_conv(k3, 8, 4), init_conv(k4, 16, 8)]

    # 1) f32 in / f32 out (matches the torch module's dtype behaviour)
    ref = reference_forward(x, params, H, W)
    out = jax.block_until_ready(patch_conv_forward(x, params, H, W))
    assert out.shape == (B, 16, H), out.shape
    assert out.dtype == jnp.float32, out.dtype
    err = float(jnp.max(jnp.abs(out.astype(jnp.float32) - ref)))
    assert err < 1e-2, f"f32 path max abs err {err}"   # default MXU precision

    # 2) bf16 in / bf16 out, awkward B=3 (exercises the batch-pad path)
    x3 = jnp.concatenate([x, x[:1]], axis=0).astype(jnp.bfloat16)
    ref3 = reference_forward(x3.astype(jnp.float32), params, H, W)
    out3 = jax.block_until_ready(
        patch_conv_forward(x3, params, H, W, out_dtype=jnp.bfloat16))
    assert out3.shape == (3, 16, H), out3.shape
    assert out3.dtype == jnp.bfloat16, out3.dtype
    err3 = float(jnp.max(jnp.abs(out3.astype(jnp.float32) - ref3)))
    assert err3 < 2e-2, f"bf16 path max abs err {err3}"

    print("KERNEL_OK")
</pallas_src>

<mosaic_0001>
module attributes {stable_mosaic.version = 11 : i64} {
  func.func @_affine_kernel(%arg0: i32, %arg1: memref<16x10xf32, #tpu.memory_space<vmem>>, %arg2: memref<16x1xf32, #tpu.memory_space<vmem>>, %arg3: memref<1x64x10xf32, #tpu.memory_space<vmem>>, %arg4: memref<1x16x64xf32, #tpu.memory_space<vmem>>) attributes {dimension_semantics = [#tpu.dimension_semantics<parallel>], iteration_bounds = array<i64: 2>, scalar_prefetch = 0 : i64, scratch_operands = 0 : i64, tpu.core_type = #tpu.core_type<tc>, window_params = [{pipeline_mode = #tpu.pipeline_mode<synchronous>, transform_indices = @transform_0, window_bounds = array<i64: 16, 10>}, {pipeline_mode = #tpu.pipeline_mode<synchronous>, transform_indices = @transform_1, window_bounds = array<i64: 16, 1>}, {transform_indices = @transform_2, window_bounds = array<i64: 1, 64, 10>}, {transform_indices = @transform_3, window_bounds = array<i64: 1, 16, 64>}]} {
    %c0 = arith.constant 0 : index
    %c0_0 = arith.constant 0 : index
    %0 = vector.load %arg1[%c0, %c0_0] : memref<16x10xf32, #tpu.memory_space<vmem>>, vector<16x10xf32>
    %c0_1 = arith.constant 0 : index
    %c0_2 = arith.constant 0 : index
    %1 = vector.load %arg2[%c0_1, %c0_2] : memref<16x1xf32, #tpu.memory_space<vmem>>, vector<16x1xf32>
    %c0_i32 = arith.constant 0 : i32
    %2 = arith.index_cast %c0_i32 : i32 to index
    %c0_3 = arith.constant 0 : index
    %c0_4 = arith.constant 0 : index
    %3 = vector.load %arg3[%2, %c0_3, %c0_4] : memref<1x64x10xf32, #tpu.memory_space<vmem>>, vector<1x64x10xf32>
    %4 = vector.shape_cast %3 : vector<1x64x10xf32> to vector<64x10xf32>
    %cst = arith.constant dense<0.000000e+00> : vector<16x64xf32>
    %5 = tpu.matmul %0, %4, %cst {dimension_numbers = #tpu.dot_dimension_numbers<[1], [1], [0], [0], [0, 0, 1, 0], [], []>} : vector<16x10xf32>, vector<64x10xf32>, vector<16x64xf32> -> vector<16x64xf32>
    %6 = vector.broadcast %1 : vector<16x1xf32> to vector<16x64xf32>
    %7 = arith.addf %5, %6 : vector<16x64xf32>
    %8 = arith.index_cast %c0_i32 : i32 to index
    %c0_5 = arith.constant 0 : index
    %c0_6 = arith.constant 0 : index
    %9 = vector.load %arg4[%8, %c0_5, %c0_6] : memref<1x16x64xf32, #tpu.memory_space<vmem>>, vector<1x16x64xf32>
    %10 = vector.shape_cast %9 : vector<1x16x64xf32> to vector<16x64xf32>
    %11 = vector.shape_cast %7 : vector<16x64xf32> to vector<1x16x64xf32>
    tpu.vector_store %arg4[%8, %c0_5, %c0_6], %11 {strides = array<i32>} : memref<1x16x64xf32, #tpu.memory_space<vmem>>, vector<1x16x64xf32>,
    %c1_i32 = arith.constant 1 : i32
    return
  }
  func.func @transform_0(%arg0: i32) -> (i32, i32) {
    %c0_i32 = arith.constant 0 : i32
    %c0_i32_0 = arith.constant 0 : i32
    %c0_i32_1 = arith.constant 0 : i32
    return %c0_i32, %c0_i32_0 : i32, i32
  }
  func.func @transform_1(%arg0: i32) -> (i32, i32) {
    %c0_i32 = arith.constant 0 : i32
    %c0_i32_0 = arith.constant 0 : i32
    %c0_i32_1 = arith.constant 0 : i32
    return %c0_i32, %c0_i32_0 : i32, i32
  }
  func.func @transform_2(%arg0: i32) -> (i32, i32, i32) {
    %c0_i32 = arith.constant 0 : i32
    %c0_i32_0 = arith.constant 0 : i32
    %c0_i32_1 = arith.constant 0 : i32
    return %arg0, %c0_i32, %c0_i32_0 : i32, i32, i32
  }
  func.func @transform_3(%arg0: i32) -> (i32, i32, i32) {
    %c0_i32 = arith.constant 0 : i32
    %c0_i32_0 = arith.constant 0 : i32
    %c0_i32_1 = arith.constant 0 : i32
    return %arg0, %c0_i32, %c0_i32_0 : i32, i32, i32
  }
}

</mosaic_0001>

<bundles_post_ra>
// kernel: tpu_custom_call.1
= control target key start
LH: loop header
LB: loop body
LE: loop exit
PB: predicated region body
PF: predicated region fallthrough
CT: control target
= control target key end

     0   :  { %8 = vsyncpa [#allocation3], 0  ;;  %s723_s0 = inlined_call_operand.vmem [shape: f32[16,10], index: 0, kind: input, shape index: {}]   ;;  %s724_s1 = inlined_call_operand.vmem [shape: f32[16,1], index: 1, kind: input, shape index: {}]   ;;  %s725_s2 = inlined_call_operand.vmem [shape: f32[2,64,10], index: 2, kind: input, shape index: {}]   ;;  %s726_s3 = inlined_call_operand.hbm [shape: f32[2,16,64], index: 3, kind: output, shape index: {}]  }
   0x1   :  { %10 = vsyncpa [#allocation3 + $0x1], 0  ;;  %s584_s12 = smov 0   ;;  %s586_s13 = smov 0  }
   0x2   :  { %s588_s14 = smov 0   ;;  %s590_s15 = smov 0  }
   0x3 LB: > { %s605_s16 = sadd.s32 4294967295, %s558_s15   ;;  %s376_s17 = sadd.s32 4294967294, %s558_s15   ;;  %s558_s15 = sphi %s590_s15, %s734_s15   ;;  %s554_s14 = sphi %s588_s14, %s733_s14   ;;  %s550_s13 = sphi %s586_s13, %s732_s13   ;;  %s546_s12 = sphi %s584_s12, %s731_s12  }
   0x4   : > { %s609_s18 = sadd.s32 1, %s558_s15   ;;  %s91_s19 = sadd.s32 1, %s554_s14 }
   0x5   : > { %s88_s20 = ssub.s32 %s558_s15, %s609_s18  ;;  %p101_p0 = scmp.ne.s32.totalorder %s554_s14, %s550_s13 }
   0x6   : > { %p89_p1 = scmp.eq.s32.totalorder %s88_s20, 0  ;;  %p102_p2 = scmp.eq.s32.totalorder %s605_s16, 1 }
   0x7   : > { %p107_p3 = scmp.ne.s32.totalorder %s550_s13, %s546_s12  ;;  %p108_p4 = scmp.eq.s32.totalorder %s376_s17, 1 }
   0x8   : > { %s620_s21 = scalar_select %p89_p1, %s554_s14, %s91_s19  }
   0x9   : > { %p622_p5 = por %p102_p2, %p101_p0  ;;  %p626_p6 = por %p108_p4, %p107_p3 }
   0xa   : > { %p379_p7 = scmp.ge.s32.totalorder %s558_s15, 1  ;;  %p140_p8 = scmp.lt.s32.totalorder %s558_s15, 3 }
   0xc   : > { %p141_p9 = pnand %p379_p7, %p140_p8 }
   0xd   : > { %p164_p10 = scmp.lt.s32.totalorder (!%p141_p9), %s605_s16, 1  ;;  %vm191_vm0 = vcmask (!%p141_p9), 80896   ;;  %v169_v0 = vld [vmem:[%s723_s0] sm:$0xff] (!%p141_p9)  ;;  %v560_v2 = vmov (!%p141_p9), 0   ;;  %v172_v3 = vld [vmem:[%s724_s1 + $0x8] sm:$0xff] (!%p141_p9)  ;;  %s161_s10 = sand.u32 (!%p141_p9), 1, %s550_s13  }
   0xe   : > { %144 = sbr.rel (%p141_p9) target bundleno = 290 (0x122), region = 32  ;;  %v171_v1 = vld [vmem:[%s724_s1] sm:$0xff] (!%p141_p9)  ;;  %426 = vmatprep.mubr.msk.f32.mxu0 (!%p141_p9), %vm191_vm0, %v169_v0  ;;  %495 = vset.pattern.permute.xlu0 (!%p141_p9), %v560_v2  ;;  %vm649_vm1 = vmpackc.low (!%p141_p9), %vm191_vm0, %vm191_vm0  ;;  %v170_v17 = vld [vmem:[%s723_s0 + $0x8] sm:$0xff] (!%p141_p9)  ;;  %s380_s11 = sshll.u32 (!%p141_p9), %s161_s10, 4  ;;  %vm297_vm2 = vcmask (!%p141_p9), 523264  }
   0xf   : > { %183 = vperm.xlu0 (!%p141_p9), %495, %v171_v1   ;;  %s163_s17 = scalar_lea.vmem (!%p141_p9), [#allocation2], %s380_s11  ;;  %s399_s20 = sshll.u32 (!%p141_p9), %s605_s16, 8 }
  0x10   : > { %s314_s19 = sshll.u32 (!%p141_p9), %s163_s17, 4  ;;  %s680_s26 = scalar_lea.hbm (!%p141_p9), %s726_s3, %s399_s20  ;;  %s675_s19 = int_to_ptr.vmem [resolvable:$true] %s314_s19 }
  0x11   : > { %s682_s27 = scalar_lea.sflag (!%p141_p9), [#allocation3], %s161_s10 }
  0x13   : > { %188 = vperm.xlu0 (!%p141_p9), %495, %v172_v3  }
  0x15   : > { %s165_s28 = scalar_select %p164_p10, %s605_s16, 1 }
  0x16   : > { %s496_s16 = scalar_lea.vmem %s675_s19, 256 }
  0x17   : > { %s398_s4 = sshll.u32 %s165_s28, 6  ;;  %p497_p11 = scmp.ne.s32.totalorder %s675_s19, %s496_s16 }
  0x18   : > { %s168_s7 = scalar_lea.vmem %s725_s2, %s398_s4  ;;  %s561_s28 = smov [#allocation2]  }
  0x19   : > { %v173_v5 = vld [vmem:[%s168_s7] sm:$0xff]  ;;  %v174_v6 = vld [vmem:[%s168_s7 + $0x8] sm:$0xff]  ;;  %v175_v7 = vld [vmem:[%s168_s7 + $0x10] sm:$0xff]  ;;  %p498_p12 = pnand %p497_p11, %p622_p5  ;;  %s500_s29 = sshll.u32 %s561_s28, 4  ;;  %s501_s29 = int_to_ptr.vmem [resolvable:$false] %s500_s29 }
  0x1a   : > { %v429_v8 = vpack.c.bf16 %v174_v6, %v173_v5  ;;  %v176_v9 = vld [vmem:[%s168_s7 + $0x18] sm:$0xff]  ;;  %v177_v11 = vld [vmem:[%s168_s7 + $0x20] sm:$0xff]  ;;  %v178_v12 = vld [vmem:[%s168_s7 + $0x28] sm:$0xff]  ;;  %s502_s30 = scalar_lea.vmem %s501_s29, 512  ;;  %p503_p0 = scmp.lt.s32.totalorder %s675_s19, %s501_s29 }
  0x1b   : > { %v435_v10 = vpack.c.bf16 %v176_v9, %v175_v7  ;;  %v441_v13 = vpack.c.bf16 %v178_v12, %v177_v11  ;;  %v179_v14 = vld [vmem:[%s168_s7 + $0x30] sm:$0xff]  ;;  %v180_v15 = vld [vmem:[%s168_s7 + $0x38] sm:$0xff]  ;;  %p499_p13 = pneg %p498_p12  ;;  %p504_p1 = scmp.lt.s32.totalorder %s502_s30, %s496_s16 }
  0x1c   : > { %431 = vmatprep.subr.msk.bf16.mxu0 %vm649_vm1, %v429_v8  ;;  %v447_v16 = vpack.c.bf16 %v180_v15, %v179_v14 }
  0x1d   : > { %434 = vmatpush3.bf16.xpose.msk.msra.mxu0 %vm649_vm1, %v429_v8  ;;  %p505_p2 = por %p504_p1, %p503_p0 }
  0x1e   : > { %437 = vmatprep.subr.msk.bf16.mxu0 %vm649_vm1, %v435_v10 }
  0x1f   : > { %p506_p3 = pnand %p505_p2, %p499_p13 }
  0x25   : > { %440 = vmatpush3.bf16.xpose.msk.msra.mxu0 %vm649_vm1, %v435_v10 }
  0x26   : > { %443 = vmatprep.subr.msk.bf16.mxu0 %vm649_vm1, %v441_v13 }
  0x2d   : > { %446 = vmatpush3.bf16.xpose.msk.msra.mxu0 %vm649_vm1, %v441_v13 }
  0x2e   : > { %449 = vmatprep.subr.msk.bf16.mxu0 %vm649_vm1, %v447_v16 }
  0x35   : > { %452 = vmatpush3.bf16.xpose.msk.msra.mxu0 %vm649_vm1, %v447_v16 }
  0x3c   : > { %427 = vmatmul.mubr.msk.f32.vlgmr.msra.gmra.mrb[0].mxu0 %vm191_vm0, %v170_v17 }
  0x8e   : > { %v184_v18 = vpop.permute.xlu0 %183 }
  0x92   : > { %v189_v19 = vpop.permute.xlu0 %188 }
 0x10f   : > { %v428_v20 = vpop.f32.mrb[0].mxu0 }
 0x110   : > { %v294_v21 = vadd.f32 %v428_v20, %v189_v19  ;;  %v288_v22 = vpop.f32.mrb[1].mxu0 }
 0x111   : > { %v289_v23 = vadd.f32 %v288_v22, %v184_v18 }
 0x112   : > { %299 = vst.msk [vmem:[%s163_s17 + $0x8] sm:$0xff] %vm297_vm2, %v294_v21 }
 0x113   : > { %298 = vst.msk [vmem:[%s163_s17] sm:$0xff] %vm297_vm2, %v289_v23 }
 0x114   : > { %509 = shalt.err (!%p506_p3)
}
 0x115   : > { %s510_s4 = scalar_lea.hbm %s680_s26, 256  ;;  %s514_s7 = scalar_lea.hbm %s726_s3, 512 }
 0x116   : > { %p511_p4 = scmp.ne.s32.totalorder %s680_s26, %s510_s4  ;;  %p515_p9 = scmp.lt.u32.totalorder %s680_s26, %s726_s3 }
 0x117   : > { %p516_p10 = scmp.lt.u32.totalorder %s514_s7, %s510_s4  ;;  %p518_p12 = scmp.lt.u32.totalorder %s510_s4, %s680_s26 }
 0x118   : > { %p512_p7 = pnand %p511_p4, %p622_p5 }
 0x119   : > { %p517_p11 = por %p516_p10, %p515_p9 }
 0x11a   : > { %p513_p8 = pneg %p512_p7 }
 0x11b   : > { %p519_p13 = por %p518_p12, %p517_p11 }
 0x11d   : > { %p520_p0 = pnand %p519_p13, %p513_p8 }
 0x11f   : > { %523 = shalt.err (!%p520_p0)
}
 0x120   : > { %s562_s10 = smov 128   ;;  %s563_s11 = smov 8  }
 0x121   : > { %453 = dma.vmem_to_hbm [thread:$0]  (%p622_p5), %s675_s19, 256, %s680_s26, %s682_s27, %s562_s10, %s562_s10, %s563_s11  }
 0x122 PF: > { %p459_p1 = scmp.ge.s32.totalorder %s558_s15, 2  ;;  %s329_s17 = sand.u32 1, %s546_s12  }
 0x123   : > { %s330_s20 = scalar_lea.sflag [#allocation3], %s329_s17 }
 0x124   : > { %p456_p2 = pnand %p459_p1, %p626_p6 }
 0x126   : > { %541 = dma.done.wait (!%p456_p2), %s330_s20, 256  }
 0x127   : > { %543 = vsyncadd (!%p456_p2), %s330_s20, 4294967040  ;;  %p13_p3 = scmp.ge.s32.totalorder %s609_s18, 4   ;;  %s731_s12 = smov %s550_s13 }
 0x128   : > { %s732_s13 = smov %s554_s14  ;;  %s733_s14 = smov %s620_s21 }
 0x129   : > { %s734_s15 = smov %s609_s18  ;;  %15 = sbr.rel (!%p13_p3) target bundleno = 3 (0x3), region = 67 }
 0x130   :  { %335 = vsyncpa [#allocation3], 1 }
 0x131   :  { %337 = vsyncpa [#allocation3 + $0x1], 1 }

</bundles_post_ra>
